<compile_context>
chip_gen: v7x
topology: tpu7x:2x2x1
jax: 0.10.0
libtpu: 0.0.40
codegen_flags: <defaults>
</compile_context>

<pallas_src>
import functools

import jax
import jax.numpy as jnp
from jax import lax
from jax.experimental import pallas as pl
from jax.experimental.pallas import tpu as pltpu

K = 7      # conv kernel size
PAD = 3    # conv padding


def basic_block_kernel(x_ref, w1_ref, b1_ref, w2_ref, b2_ref, out_ref):
    # x_ref   : (NB, C, L)   f32  unpadded input block (NCL layout)
    # w1_ref  : (C, K*C)     bf16 conv1 weights, BN1 scale folded, tap-major
    # b1_ref  : (C, 1)       f32  folded BN1 bias
    # w2_ref  : (C, K*C)     bf16 conv2 weights, BN2 scale folded, tap-major
    # b2_ref  : (C, 1)       f32  folded BN2 bias
    # out_ref : (NB, C, L)   f32
    NB, C, L = out_ref.shape
    zpad = jnp.zeros((C, PAD), jnp.bfloat16)

    w1 = w1_ref[...]
    b1 = b1_ref[...]
    w2 = w2_ref[...]
    b2 = b2_ref[...]

    def conv_bn(x_bf16, w, bias):
        # x_bf16: (C, L) bf16. Pad along lanes, im2col along sublanes, one
        # MXU matmul: (C, K*C) @ (K*C, L) -> (C, L) f32, then folded BN bias.
        xp = jnp.concatenate([zpad, x_bf16, zpad], axis=1)       # (C, L+2*PAD)
        lhs = jnp.concatenate([xp[:, k:k + L] for k in range(K)], axis=0)
        return jnp.dot(w, lhs, preferred_element_type=jnp.float32) + bias

    for bi in range(NB):                     # NB is a small static batch block
        x = x_ref[bi]                        # (C, L) f32 — also the residual
        out1 = jnp.maximum(conv_bn(x.astype(jnp.bfloat16), w1, b1), 0.0)
        # TODO(synk): nn.Dropout(0.2) is identity in eval mode; training-mode
        # random masking is not implemented here.
        out2 = conv_bn(out1.astype(jnp.bfloat16), w2, b2) + x    # + residual
        out_ref[bi] = jnp.maximum(out2, 0.0).astype(out_ref.dtype)


@functools.partial(jax.jit, static_argnames=("eps",))
def basic_block(x_ncl, params, eps=1e-5):
    """x_ncl: (N, Cin, L) float32, PyTorch NCL layout. Returns (N, Cout, L)."""
    N, Cin, L = x_ncl.shape
    w1 = params["w1"]                         # (planes, inplanes, K) torch layout
    w2 = params["w2"]                         # (planes, planes, K)
    Cout = w1.shape[0]
    assert Cin == Cout, "no-downsample BasicBlock needs inplanes == planes"

    # ---- fold BN (running stats) into per-out-channel weight scale + bias ----
    s1 = params["g1"] / jnp.sqrt(params["v1"] + eps)
    b1f = (params["b1"] - params["m1"] * s1).reshape(Cout, 1).astype(jnp.float32)
    s2 = params["g2"] / jnp.sqrt(params["v2"] + eps)
    b2f = (params["b2"] - params["m2"] * s2).reshape(Cout, 1).astype(jnp.float32)

    # weights -> (Cout, K*Cin), tap-major along the contraction, bf16 for MXU
    w1f = jnp.transpose(w1 * s1[:, None, None], (0, 2, 1)).reshape(Cout, K * Cin)
    w2f = jnp.transpose(w2 * s2[:, None, None], (0, 2, 1)).reshape(Cout, K * Cout)
    w1f = w1f.astype(jnp.bfloat16)
    w2f = w2f.astype(jnp.bfloat16)

    # Batch block size: amortize per-grid-step overhead while keeping the
    # per-step input block comfortably inside VMEM.
    NB = 1
    for cand in (8, 4, 2):
        if N % cand == 0 and cand * Cin * L * 4 <= (4 << 20):
            NB = cand
            break

    out = pl.pallas_call(
        basic_block_kernel,
        out_shape=jax.ShapeDtypeStruct((N, Cout, L), jnp.float32),
        grid_spec=pltpu.PrefetchScalarGridSpec(
            num_scalar_prefetch=0,
            grid=(N // NB,),
            in_specs=[
                pl.BlockSpec((NB, Cin, L), lambda n: (n, 0, 0)),      # x (NCL)
                pl.BlockSpec((Cout, K * Cin), lambda n: (0, 0)),      # w1 (folded)
                pl.BlockSpec((Cout, 1), lambda n: (0, 0)),            # b1 (folded)
                pl.BlockSpec((Cout, K * Cout), lambda n: (0, 0)),     # w2 (folded)
                pl.BlockSpec((Cout, 1), lambda n: (0, 0)),            # b2 (folded)
            ],
            out_specs=pl.BlockSpec((NB, Cout, L), lambda n: (n, 0, 0)),
        ),
        compiler_params=pltpu.CompilerParams(
            dimension_semantics=("parallel",),
            vmem_limit_bytes=32 * 1024 * 1024),
    )(x_ncl, w1f, b1f, w2f, b2f)

    return out                                                   # already NCL


def _reference(x_ncl, params, eps=1e-5):
    """Pure-JAX f32 reference mirroring the PyTorch forward (eval mode)."""
    def conv(x, w):
        return lax.conv_general_dilated(
            x, w, window_strides=(1,), padding=((PAD, PAD),),
            dimension_numbers=("NCH", "OIH", "NCH"))

    def bn(x, g, b, m, v):
        return (x - m[None, :, None]) / jnp.sqrt(v[None, :, None] + eps) \
            * g[None, :, None] + b[None, :, None]

    out = conv(x_ncl, params["w1"])
    out = jnp.maximum(bn(out, params["g1"], params["b1"],
                         params["m1"], params["v1"]), 0.0)
    out = conv(out, params["w2"])
    out = bn(out, params["g2"], params["b2"], params["m2"], params["v2"])
    out = out + x_ncl
    return jnp.maximum(out, 0.0)


if __name__ == "__main__":
    N, C, L = 2, 4, 16          # batch=2, inplanes=planes=4, seq length=16
    key = jax.random.PRNGKey(0)
    keys = jax.random.split(key, 10)

    x = jax.random.normal(keys[0], (N, C, L), jnp.float32)
    params = {
        "w1": 0.1 * jax.random.normal(keys[1], (C, C, K), jnp.float32),
        "w2": 0.1 * jax.random.normal(keys[2], (C, C, K), jnp.float32),
        "g1": 1.0 + 0.1 * jax.random.normal(keys[3], (C,), jnp.float32),
        "b1": 0.1 * jax.random.normal(keys[4], (C,), jnp.float32),
        "m1": 0.1 * jax.random.normal(keys[5], (C,), jnp.float32),
        "v1": jnp.abs(jax.random.normal(keys[6], (C,), jnp.float32)) + 0.5,
        "g2": 1.0 + 0.1 * jax.random.normal(keys[7], (C,), jnp.float32),
        "b2": 0.1 * jax.random.normal(keys[8], (C,), jnp.float32),
        "m2": 0.1 * jax.random.normal(keys[9], (C,), jnp.float32),
        "v2": jnp.abs(jax.random.normal(keys[6], (C,), jnp.float32)) + 0.7,
    }

    out = jax.block_until_ready(basic_block(x, params))
    ref = jax.block_until_ready(_reference(x, params))

    assert out.shape == (N, C, L), out.shape
    # bf16 MXU operands vs f32 reference -> bf16-level tolerance.
    assert jnp.allclose(out, ref, atol=5e-2, rtol=5e-2), \
        float(jnp.max(jnp.abs(out - ref)))
    print("KERNEL_OK")
</pallas_src>

<mosaic_0001>
module attributes {stable_mosaic.version = 11 : i64} {
  func.func @basic_block_kernel(%arg0: i32, %arg1: memref<2x4x16xf32, #tpu.memory_space<vmem>>, %arg2: memref<4x28xbf16, #tpu.memory_space<vmem>>, %arg3: memref<4x1xf32, #tpu.memory_space<vmem>>, %arg4: memref<4x28xbf16, #tpu.memory_space<vmem>>, %arg5: memref<4x1xf32, #tpu.memory_space<vmem>>, %arg6: memref<2x4x16xf32, #tpu.memory_space<vmem>>) attributes {dimension_semantics = [#tpu.dimension_semantics<parallel>], iteration_bounds = array<i64: 1>, scalar_prefetch = 0 : i64, scratch_operands = 0 : i64, tpu.core_type = #tpu.core_type<tc>, window_params = [{transform_indices = @transform_0, window_bounds = array<i64: 2, 4, 16>}, {pipeline_mode = #tpu.pipeline_mode<synchronous>, transform_indices = @transform_1, window_bounds = array<i64: 4, 28>}, {pipeline_mode = #tpu.pipeline_mode<synchronous>, transform_indices = @transform_2, window_bounds = array<i64: 4, 1>}, {pipeline_mode = #tpu.pipeline_mode<synchronous>, transform_indices = @transform_3, window_bounds = array<i64: 4, 28>}, {pipeline_mode = #tpu.pipeline_mode<synchronous>, transform_indices = @transform_4, window_bounds = array<i64: 4, 1>}, {transform_indices = @transform_5, window_bounds = array<i64: 2, 4, 16>}]} {
    %cst = arith.constant 0.000000e+00 : bf16
    %0 = vector.broadcast %cst : bf16 to vector<4x3xbf16>
    %c0 = arith.constant 0 : index
    %c0_0 = arith.constant 0 : index
    %1 = vector.load %arg2[%c0, %c0_0] : memref<4x28xbf16, #tpu.memory_space<vmem>>, vector<4x28xbf16>
    %c0_1 = arith.constant 0 : index
    %c0_2 = arith.constant 0 : index
    %2 = vector.load %arg3[%c0_1, %c0_2] : memref<4x1xf32, #tpu.memory_space<vmem>>, vector<4x1xf32>
    %c0_3 = arith.constant 0 : index
    %c0_4 = arith.constant 0 : index
    %3 = vector.load %arg4[%c0_3, %c0_4] : memref<4x28xbf16, #tpu.memory_space<vmem>>, vector<4x28xbf16>
    %c0_5 = arith.constant 0 : index
    %c0_6 = arith.constant 0 : index
    %4 = vector.load %arg5[%c0_5, %c0_6] : memref<4x1xf32, #tpu.memory_space<vmem>>, vector<4x1xf32>
    %c0_7 = arith.constant 0 : index
    %c0_8 = arith.constant 0 : index
    %c0_9 = arith.constant 0 : index
    %5 = vector.load %arg1[%c0_7, %c0_8, %c0_9] : memref<2x4x16xf32, #tpu.memory_space<vmem>>, vector<1x4x16xf32>
    %6 = vector.shape_cast %5 : vector<1x4x16xf32> to vector<4x16xf32>
    %7 = arith.truncf %6 : vector<4x16xf32> to vector<4x16xbf16>
    %8 = tpu.concatenate %0, %7, %0 in 1 : vector<4x3xbf16>, vector<4x16xbf16>, vector<4x3xbf16> -> vector<4x22xbf16>
    %9 = vector.extract_strided_slice %8 {offsets = [0, 0], sizes = [4, 16], strides = [1, 1]} : vector<4x22xbf16> to vector<4x16xbf16>
    %10 = vector.extract_strided_slice %8 {offsets = [0, 1], sizes = [4, 16], strides = [1, 1]} : vector<4x22xbf16> to vector<4x16xbf16>
    %11 = vector.extract_strided_slice %8 {offsets = [0, 2], sizes = [4, 16], strides = [1, 1]} : vector<4x22xbf16> to vector<4x16xbf16>
    %12 = vector.extract_strided_slice %8 {offsets = [0, 3], sizes = [4, 16], strides = [1, 1]} : vector<4x22xbf16> to vector<4x16xbf16>
    %13 = vector.extract_strided_slice %8 {offsets = [0, 4], sizes = [4, 16], strides = [1, 1]} : vector<4x22xbf16> to vector<4x16xbf16>
    %14 = vector.extract_strided_slice %8 {offsets = [0, 5], sizes = [4, 16], strides = [1, 1]} : vector<4x22xbf16> to vector<4x16xbf16>
    %15 = vector.extract_strided_slice %8 {offsets = [0, 6], sizes = [4, 16], strides = [1, 1]} : vector<4x22xbf16> to vector<4x16xbf16>
    %16 = tpu.concatenate %9, %10, %11, %12, %13, %14, %15 in 0 : vector<4x16xbf16>, vector<4x16xbf16>, vector<4x16xbf16>, vector<4x16xbf16>, vector<4x16xbf16>, vector<4x16xbf16>, vector<4x16xbf16> -> vector<28x16xbf16>
    %cst_10 = arith.constant dense<0.000000e+00> : vector<4x16xf32>
    %17 = tpu.matmul %1, %16, %cst_10 {dimension_numbers = #tpu.dot_dimension_numbers<[1], [0], [0], [1], [0, 0, 1, 1], [], []>} : vector<4x28xbf16>, vector<28x16xbf16>, vector<4x16xf32> -> vector<4x16xf32>
    %18 = vector.broadcast %2 : vector<4x1xf32> to vector<4x16xf32>
    %19 = arith.addf %17, %18 : vector<4x16xf32>
    %cst_11 = arith.constant 0.000000e+00 : f32
    %20 = vector.broadcast %cst_11 : f32 to vector<4x16xf32>
    %21 = arith.maximumf %19, %20 : vector<4x16xf32>
    %22 = arith.truncf %21 : vector<4x16xf32> to vector<4x16xbf16>
    %23 = tpu.concatenate %0, %22, %0 in 1 : vector<4x3xbf16>, vector<4x16xbf16>, vector<4x3xbf16> -> vector<4x22xbf16>
    %24 = vector.extract_strided_slice %23 {offsets = [0, 0], sizes = [4, 16], strides = [1, 1]} : vector<4x22xbf16> to vector<4x16xbf16>
    %25 = vector.extract_strided_slice %23 {offsets = [0, 1], sizes = [4, 16], strides = [1, 1]} : vector<4x22xbf16> to vector<4x16xbf16>
    %26 = vector.extract_strided_slice %23 {offsets = [0, 2], sizes = [4, 16], strides = [1, 1]} : vector<4x22xbf16> to vector<4x16xbf16>
    %27 = vector.extract_strided_slice %23 {offsets = [0, 3], sizes = [4, 16], strides = [1, 1]} : vector<4x22xbf16> to vector<4x16xbf16>
    %28 = vector.extract_strided_slice %23 {offsets = [0, 4], sizes = [4, 16], strides = [1, 1]} : vector<4x22xbf16> to vector<4x16xbf16>
    %29 = vector.extract_strided_slice %23 {offsets = [0, 5], sizes = [4, 16], strides = [1, 1]} : vector<4x22xbf16> to vector<4x16xbf16>
    %30 = vector.extract_strided_slice %23 {offsets = [0, 6], sizes = [4, 16], strides = [1, 1]} : vector<4x22xbf16> to vector<4x16xbf16>
    %31 = tpu.concatenate %24, %25, %26, %27, %28, %29, %30 in 0 : vector<4x16xbf16>, vector<4x16xbf16>, vector<4x16xbf16>, vector<4x16xbf16>, vector<4x16xbf16>, vector<4x16xbf16>, vector<4x16xbf16> -> vector<28x16xbf16>
    %cst_12 = arith.constant dense<0.000000e+00> : vector<4x16xf32>
    %32 = tpu.matmul %3, %31, %cst_12 {dimension_numbers = #tpu.dot_dimension_numbers<[1], [0], [0], [1], [0, 0, 1, 1], [], []>} : vector<4x28xbf16>, vector<28x16xbf16>, vector<4x16xf32> -> vector<4x16xf32>
    %33 = vector.broadcast %4 : vector<4x1xf32> to vector<4x16xf32>
    %34 = arith.addf %32, %33 : vector<4x16xf32>
    %35 = arith.addf %34, %6 : vector<4x16xf32>
    %cst_13 = arith.constant 0.000000e+00 : f32
    %36 = vector.broadcast %cst_13 : f32 to vector<4x16xf32>
    %37 = arith.maximumf %35, %36 : vector<4x16xf32>
    %c0_14 = arith.constant 0 : index
    %c0_15 = arith.constant 0 : index
    %c0_16 = arith.constant 0 : index
    %38 = vector.load %arg6[%c0_14, %c0_15, %c0_16] : memref<2x4x16xf32, #tpu.memory_space<vmem>>, vector<1x4x16xf32>
    %39 = vector.shape_cast %38 : vector<1x4x16xf32> to vector<4x16xf32>
    %40 = vector.shape_cast %37 : vector<4x16xf32> to vector<1x4x16xf32>
    tpu.vector_store %arg6[%c0_14, %c0_15, %c0_16], %40 {strides = array<i32>} : memref<2x4x16xf32, #tpu.memory_space<vmem>>, vector<1x4x16xf32>,
    %c1 = arith.constant 1 : index
    %c0_17 = arith.constant 0 : index
    %c0_18 = arith.constant 0 : index
    %41 = vector.load %arg1[%c1, %c0_17, %c0_18] : memref<2x4x16xf32, #tpu.memory_space<vmem>>, vector<1x4x16xf32>
    %42 = vector.shape_cast %41 : vector<1x4x16xf32> to vector<4x16xf32>
    %43 = arith.truncf %42 : vector<4x16xf32> to vector<4x16xbf16>
    %44 = tpu.concatenate %0, %43, %0 in 1 : vector<4x3xbf16>, vector<4x16xbf16>, vector<4x3xbf16> -> vector<4x22xbf16>
    %45 = vector.extract_strided_slice %44 {offsets = [0, 0], sizes = [4, 16], strides = [1, 1]} : vector<4x22xbf16> to vector<4x16xbf16>
    %46 = vector.extract_strided_slice %44 {offsets = [0, 1], sizes = [4, 16], strides = [1, 1]} : vector<4x22xbf16> to vector<4x16xbf16>
    %47 = vector.extract_strided_slice %44 {offsets = [0, 2], sizes = [4, 16], strides = [1, 1]} : vector<4x22xbf16> to vector<4x16xbf16>
    %48 = vector.extract_strided_slice %44 {offsets = [0, 3], sizes = [4, 16], strides = [1, 1]} : vector<4x22xbf16> to vector<4x16xbf16>
    %49 = vector.extract_strided_slice %44 {offsets = [0, 4], sizes = [4, 16], strides = [1, 1]} : vector<4x22xbf16> to vector<4x16xbf16>
    %50 = vector.extract_strided_slice %44 {offsets = [0, 5], sizes = [4, 16], strides = [1, 1]} : vector<4x22xbf16> to vector<4x16xbf16>
    %51 = vector.extract_strided_slice %44 {offsets = [0, 6], sizes = [4, 16], strides = [1, 1]} : vector<4x22xbf16> to vector<4x16xbf16>
    %52 = tpu.concatenate %45, %46, %47, %48, %49, %50, %51 in 0 : vector<4x16xbf16>, vector<4x16xbf16>, vector<4x16xbf16>, vector<4x16xbf16>, vector<4x16xbf16>, vector<4x16xbf16>, vector<4x16xbf16> -> vector<28x16xbf16>
    %cst_19 = arith.constant dense<0.000000e+00> : vector<4x16xf32>
    %53 = tpu.matmul %1, %52, %cst_19 {dimension_numbers = #tpu.dot_dimension_numbers<[1], [0], [0], [1], [0, 0, 1, 1], [], []>} : vector<4x28xbf16>, vector<28x16xbf16>, vector<4x16xf32> -> vector<4x16xf32>
    %54 = vector.broadcast %2 : vector<4x1xf32> to vector<4x16xf32>
    %55 = arith.addf %53, %54 : vector<4x16xf32>
    %cst_20 = arith.constant 0.000000e+00 : f32
    %56 = vector.broadcast %cst_20 : f32 to vector<4x16xf32>
    %57 = arith.maximumf %55, %56 : vector<4x16xf32>
    %58 = arith.truncf %57 : vector<4x16xf32> to vector<4x16xbf16>
    %59 = tpu.concatenate %0, %58, %0 in 1 : vector<4x3xbf16>, vector<4x16xbf16>, vector<4x3xbf16> -> vector<4x22xbf16>
    %60 = vector.extract_strided_slice %59 {offsets = [0, 0], sizes = [4, 16], strides = [1, 1]} : vector<4x22xbf16> to vector<4x16xbf16>
    %61 = vector.extract_strided_slice %59 {offsets = [0, 1], sizes = [4, 16], strides = [1, 1]} : vector<4x22xbf16> to vector<4x16xbf16>
    %62 = vector.extract_strided_slice %59 {offsets = [0, 2], sizes = [4, 16], strides = [1, 1]} : vector<4x22xbf16> to vector<4x16xbf16>
    %63 = vector.extract_strided_slice %59 {offsets = [0, 3], sizes = [4, 16], strides = [1, 1]} : vector<4x22xbf16> to vector<4x16xbf16>
    %64 = vector.extract_strided_slice %59 {offsets = [0, 4], sizes = [4, 16], strides = [1, 1]} : vector<4x22xbf16> to vector<4x16xbf16>
    %65 = vector.extract_strided_slice %59 {offsets = [0, 5], sizes = [4, 16], strides = [1, 1]} : vector<4x22xbf16> to vector<4x16xbf16>
    %66 = vector.extract_strided_slice %59 {offsets = [0, 6], sizes = [4, 16], strides = [1, 1]} : vector<4x22xbf16> to vector<4x16xbf16>
    %67 = tpu.concatenate %60, %61, %62, %63, %64, %65, %66 in 0 : vector<4x16xbf16>, vector<4x16xbf16>, vector<4x16xbf16>, vector<4x16xbf16>, vector<4x16xbf16>, vector<4x16xbf16>, vector<4x16xbf16> -> vector<28x16xbf16>
    %cst_21 = arith.constant dense<0.000000e+00> : vector<4x16xf32>
    %68 = tpu.matmul %3, %67, %cst_21 {dimension_numbers = #tpu.dot_dimension_numbers<[1], [0], [0], [1], [0, 0, 1, 1], [], []>} : vector<4x28xbf16>, vector<28x16xbf16>, vector<4x16xf32> -> vector<4x16xf32>
    %69 = vector.broadcast %4 : vector<4x1xf32> to vector<4x16xf32>
    %70 = arith.addf %68, %69 : vector<4x16xf32>
    %71 = arith.addf %70, %42 : vector<4x16xf32>
    %cst_22 = arith.constant 0.000000e+00 : f32
    %72 = vector.broadcast %cst_22 : f32 to vector<4x16xf32>
    %73 = arith.maximumf %71, %72 : vector<4x16xf32>
    %c1_23 = arith.constant 1 : index
    %c0_24 = arith.constant 0 : index
    %c0_25 = arith.constant 0 : index
    %74 = vector.load %arg6[%c1_23, %c0_24, %c0_25] : memref<2x4x16xf32, #tpu.memory_space<vmem>>, vector<1x4x16xf32>
    %75 = vector.shape_cast %74 : vector<1x4x16xf32> to vector<4x16xf32>
    %76 = vector.shape_cast %73 : vector<4x16xf32> to vector<1x4x16xf32>
    tpu.vector_store %arg6[%c1_23, %c0_24, %c0_25], %76 {strides = array<i32>} : memref<2x4x16xf32, #tpu.memory_space<vmem>>, vector<1x4x16xf32>,
    return
  }
  func.func @transform_0(%arg0: i32) -> (i32, i32, i32) {
    %c0_i32 = arith.constant 0 : i32
    %c0_i32_0 = arith.constant 0 : i32
    %c0_i32_1 = arith.constant 0 : i32
    return %arg0, %c0_i32, %c0_i32_0 : i32, i32, i32
  }
  func.func @transform_1(%arg0: i32) -> (i32, i32) {
    %c0_i32 = arith.constant 0 : i32
    %c0_i32_0 = arith.constant 0 : i32
    %c0_i32_1 = arith.constant 0 : i32
    return %c0_i32, %c0_i32_0 : i32, i32
  }
  func.func @transform_2(%arg0: i32) -> (i32, i32) {
    %c0_i32 = arith.constant 0 : i32
    %c0_i32_0 = arith.constant 0 : i32
    %c0_i32_1 = arith.constant 0 : i32
    return %c0_i32, %c0_i32_0 : i32, i32
  }
  func.func @transform_3(%arg0: i32) -> (i32, i32) {
    %c0_i32 = arith.constant 0 : i32
    %c0_i32_0 = arith.constant 0 : i32
    %c0_i32_1 = arith.constant 0 : i32
    return %c0_i32, %c0_i32_0 : i32, i32
  }
  func.func @transform_4(%arg0: i32) -> (i32, i32) {
    %c0_i32 = arith.constant 0 : i32
    %c0_i32_0 = arith.constant 0 : i32
    %c0_i32_1 = arith.constant 0 : i32
    return %c0_i32, %c0_i32_0 : i32, i32
  }
  func.func @transform_5(%arg0: i32) -> (i32, i32, i32) {
    %c0_i32 = arith.constant 0 : i32
    %c0_i32_0 = arith.constant 0 : i32
    %c0_i32_1 = arith.constant 0 : i32
    return %arg0, %c0_i32, %c0_i32_0 : i32, i32, i32
  }
}

</mosaic_0001>

<bundles_post_ra>
// kernel: basic_block.1
= control target key start
LH: loop header
LB: loop body
LE: loop exit
PB: predicated region body
PF: predicated region fallthrough
CT: control target
= control target key end

     0   :  { %s636_s0 = inlined_call_operand.vmem [shape: f32[2,4,16], index: 0, kind: input, shape index: {}]   ;;  %s637_s1 = inlined_call_operand.vmem [shape: bf16[4,28], index: 1, kind: input, shape index: {}]   ;;  %s638_s2 = inlined_call_operand.vmem [shape: f32[4,1], index: 2, kind: input, shape index: {}]   ;;  %s639_s3 = inlined_call_operand.vmem [shape: bf16[4,28], index: 3, kind: input, shape index: {}]   ;;  %s640_s4 = inlined_call_operand.vmem [shape: f32[4,1], index: 4, kind: input, shape index: {}]   ;;  %s641_s5 = inlined_call_operand.hbm [shape: f32[2,4,16], index: 5, kind: output, shape index: {}]  }
   0x1   :  { %v519_v0 = vld [vmem:[%s636_s0] sm:$0xf]  ;;  %v524_v1 = vld [vmem:[%s636_s0 + $0x4] sm:$0xf] }
   0x2   :  { %v27_v2 = vpack.c.bf16 %v519_v0, %v519_v0 }
   0x3   :  { %10 = vsyncpa [#allocation3], 0  ;;  %s473_s22 = smov 3   ;;  %v211_v3 = vpack.c.bf16 %v524_v1, %v524_v1  ;;  %vm31_vm0 = vcmask 23552   ;;  %vm35_vm1 = vcmask 154624   ;;  %s474_s0 = smov 124  }
   0x4   :  { %29 = vrot.lane.b32.xlu0 %v27_v2, %s473_s22  ;;  %v475_v8 = vmov 0.0   ;;  %s476_s23 = smov 125   ;;  %s477_s24 = smov 123   ;;  %vm478_vm2 = vmmov 0   ;;  %v482_v16 = vmov 0   ;;  %vm56_vm3 = vcmask 1043456  }
   0x5   :  { %403 = vmatprep.subr.bf16.mxu0 %v475_v8  ;;  %411 = vmatprep.subr.bf16.mxu1 %v475_v8  ;;  %s479_s25 = smov 127   ;;  %s480_s26 = smov 126   ;;  %v23_v18 = vld [vmem:[%s638_s2] sm:$0xf]  ;;  %vm53_vm4 = vcmask 1041408   ;;  %vm59_vm5 = vcmask 1045504  }
   0x6   :  { %407 = vmatprep.mubr.msk.bf16.mxu0 %vm478_vm2, %v475_v8  ;;  %415 = vmatprep.mubr.msk.bf16.mxu1 %vm478_vm2, %v475_v8  ;;  %s481_s27 = smov 122   ;;  %v22_v34 = vld [vmem:[%s637_s1] sm:$0x3]  ;;  %vm73_vm6 = vcmask 228352   ;;  %vm207_vm7 = vcmask 125952  }
   0x7   :  { %448 = vset.pattern.permute.xlu0 %v482_v16 }
   0x8   :  { %213 = vrot.lane.b32.xlu0 %v211_v3, %s473_s22 }
  0x76   :  { %v30_v4 = vpop.permute.xlu0 %29 }
  0x77   :  { %v34_v5 = vsel %vm31_vm0, 0, %v30_v4 }
  0x78   :  { %v36_v6 = vsel %vm35_vm1, %v34_v5, 0 }
  0x79   :  { %47 = vrot.lane.b32.xlu1 %v36_v6, %s474_s0  ;;  %v44_v7 = vrot.slane %v36_v6, 2  ;;  %v38_v12 = vrot.slane %v36_v6, 6  ;;  %v41_v14 = vrot.slane %v36_v6, 4 }
  0x7a   :  { %v214_v9 = vpop.permute.xlu0 %213 }
  0x7b   :  { %v216_v10 = vsel %vm31_vm0, 0, %v214_v9  ;;  %45 = vrot.lane.b32.xlu0 %v44_v7, %s476_s23 }
  0x7c   :  { %v217_v11 = vsel %vm35_vm1, %v216_v10, 0  ;;  %v25_v10 = vld [vmem:[%s640_s4] sm:$0xf] }
  0x7d   :  { %228 = vrot.lane.b32.xlu1 %v217_v11, %s474_s0  ;;  %v219_v13 = vrot.slane %v217_v11, 6  ;;  %v225_v15 = vrot.slane %v217_v11, 2  ;;  %v222_v17 = vrot.slane %v217_v11, 4 }
  0x7f   :  { %49 = vrot.lane.b32.xlu0 %v38_v12, %s477_s24 }
  0x81   :  { %39 = vrot.lane.b32.xlu1 %v38_v12, %s479_s25 }
  0x83   :  { %220 = vrot.lane.b32.xlu0 %v219_v13, %s479_s25 }
  0x85   :  { %42 = vrot.lane.b32.xlu1 %v41_v14, %s480_s26 }
  0x87   :  { %226 = vrot.lane.b32.xlu0 %v225_v15, %s476_s23 }
  0x89   :  { %51 = vrot.lane.b32.xlu1 %v41_v14, %s481_s27 }
  0x8b   :  { %230 = vrot.lane.b32.xlu0 %v219_v13, %s477_s24 }
  0x8d   :  { %223 = vrot.lane.b32.xlu1 %v222_v17, %s480_s26 }
  0x8f   :  { %70 = vperm.xlu0 %448, %v23_v18  }
  0x91   :  { %232 = vrot.lane.b32.xlu1 %v222_v17, %s481_s27 }
  0xeb   :  { %v48_v19 = vpop.permute.xlu1 %47 }
  0xed   :  { %v46_v20 = vpop.permute.xlu0 %45 }
  0xef   :  { %v229_v21 = vpop.permute.xlu1 %228 }
  0xf1   :  { %v50_v22 = vpop.permute.xlu0 %49 }
  0xf2   :  { %v65_v30 = vsel %vm53_vm4, %v48_v19, %v50_v22 }
  0xf3   :  { %v40_v23 = vpop.permute.xlu1 %39 }
  0xf4   :  { %v55_v25 = vsel %vm53_vm4, %v36_v6, %v40_v23 }
  0xf5   :  { %v221_v24 = vpop.permute.xlu0 %220 }
  0xf6   :  { %v235_v35 = vsel %vm53_vm4, %v217_v11, %v221_v24 }
  0xf7   :  { %v43_v26 = vpop.permute.xlu1 %42 }
  0xf8   :  { %v58_v27 = vsel %vm56_vm3, %v55_v25, %v43_v26  ;;  %v24_v25 = vld [vmem:[%s639_s3] sm:$0x3]  ;;  %s483_s3 = smov [#allocation2]  }
  0xf9   :  { %v61_v28 = vsel %vm59_vm5, %v58_v27, %v46_v20  ;;  %v227_v29 = vpop.permute.xlu0 %226  ;;  %s375_s8 = sshll.u32 %s483_s3, 4  ;;  %s376_s8 = int_to_ptr.vmem [resolvable:$true] %s375_s8 }
  0xfa   :  { %404 = vmatpush3.bf16.msra.mxu0 %v61_v28  ;;  %s449_s9 = scalar_lea.vmem %s376_s8, 128  ;;  %p454_p1 = scmp.lt.s32.totalorder %s376_s8, %s376_s8 }
  0xfb   :  { %v52_v31 = vpop.permute.xlu1 %51  ;;  %405 = vmatprep.subr.bf16.mxu0 %v475_v8  ;;  %p450_p0 = scmp.ne.s32.totalorder %s376_s8, %s449_s9  ;;  %p455_p2 = scmp.lt.s32.totalorder %s449_s9, %s449_s9 }
  0xfc   :  { %v67_v32 = vsel %vm56_vm3, %v65_v30, %v52_v31 }
  0xfd   :  { %v77_v33 = vsel %vm59_vm5, %v67_v32, 0  ;;  %v231_v37 = vpop.permute.xlu0 %230  ;;  %p456_p3 = por %p455_p2, %p454_p1 }
  0xfe   :  { %406 = vmatpush3.bf16.msra.mxu0 %v77_v33  ;;  %v243_v40 = vsel %vm53_vm4, %v229_v21, %v231_v37 }
  0xff   :  { %v224_v36 = vpop.permute.xlu1 %223  ;;  %419 = vmatprep.subr.bf16.mxu0 %v475_v8  ;;  %p457_p4 = pnand %p456_p3, %p450_p0 }
 0x100   :  { %v237_v38 = vsel %vm56_vm3, %v235_v35, %v224_v36 }
 0x101   :  { %408 = vmatmul.mubr.msk.bf16.vlgmr.msra.gmra.mrb[0].mxu0 %vm73_vm6, %v22_v34  ;;  %v239_v39 = vsel %vm59_vm5, %v237_v38, %v227_v29 }
 0x102   :  { %420 = vmatpush3.bf16.msra.mxu0 %v239_v39  ;;  %423 = vmatprep.mubr.msk.bf16.mxu0 %vm478_vm2, %v475_v8 }
 0x103   :  { %v233_v41 = vpop.permute.xlu1 %232  ;;  %421 = vmatprep.subr.bf16.mxu0 %v475_v8 }
 0x104   :  { %v245_v42 = vsel %vm56_vm3, %v243_v40, %v233_v41 }
 0x105   :  { %v246_v43 = vsel %vm59_vm5, %v245_v42, 0 }
 0x106   :  { %422 = vmatpush3.bf16.msra.mxu0 %v246_v43 }
 0x109   :  { %424 = vmatmul.mubr.msk.bf16.vlgmr.msra.gmra.mrb[4].mxu0 %vm73_vm6, %v22_v34 }
 0x10e   :  { %v71_v44 = vpop.permute.xlu0 %70 }
 0x1d4   :  { %v113_v45 = vpop.f32.mrb[0].mxu0 }
 0x1d5   :  { %v114_v46 = vadd.f32 %v113_v45, %v71_v44  ;;  %v409_v47 = vpop.f32.mrb[1].mxu0 }
 0x1d6   :  { %v116_v48 = vpop.f32.mrb[2].mxu0 }
 0x1d7   :  { %v119_v49 = vmax.f32 %v114_v46, 0.0  ;;  %v410_v50 = vpop.f32.mrb[3].mxu0 }
 0x1d9   :  { %v120_v51 = vpack.c.bf16 %v119_v49, %v119_v49 }
 0x1db   :  { %122 = vrot.lane.b32.xlu1 %v120_v51, %s473_s22 }
 0x1dc   :  { %v282_v52 = vpop.f32.mrb[4].mxu0 }
 0x1dd   :  { %v283_v53 = vadd.f32 %v282_v52, %v71_v44  ;;  %v425_v54 = vpop.f32.mrb[5].mxu0 }
 0x1de   :  { %v285_v55 = vpop.f32.mrb[6].mxu0 }
 0x1df   :  { %v288_v56 = vmax.f32 %v283_v53, 0.0  ;;  %v426_v57 = vpop.f32.mrb[7].mxu0 }
 0x1e1   :  { %v289_v58 = vpack.c.bf16 %v288_v56, %v288_v56 }
 0x1e3   :  { %291 = vrot.lane.b32.xlu1 %v289_v58, %s473_s22 }
 0x24d   :  { %v123_v59 = vpop.permute.xlu1 %122 }
 0x24e   :  { %v125_v60 = vsel %vm31_vm0, 0, %v123_v59 }
 0x24f   :  { %v126_v61 = vsel %vm35_vm1, %v125_v60, 0 }
 0x250   :  { %137 = vrot.lane.b32.xlu1 %v126_v61, %s474_s0  ;;  %v128_v62 = vrot.slane %v126_v61, 6  ;;  %v131_v63 = vrot.slane %v126_v61, 4  ;;  %v134_v2 = vrot.slane %v126_v61, 2 }
 0x252   :  { %129 = vrot.lane.b32.xlu0 %v128_v62, %s479_s25 }
 0x254   :  { %132 = vrot.lane.b32.xlu1 %v131_v63, %s480_s26 }
 0x255   :  { %v292_v3 = vpop.permute.xlu1 %291 }
 0x256   :  { %v294_v4 = vsel %vm31_vm0, 0, %v292_v3  ;;  %135 = vrot.lane.b32.xlu0 %v134_v2, %s476_s23 }
 0x257   :  { %v295_v5 = vsel %vm35_vm1, %v294_v4, 0 }
 0x258   :  { %141 = vrot.lane.b32.xlu1 %v131_v63, %s481_s27  ;;  %v297_v6 = vrot.slane %v295_v5, 6  ;;  %v300_v7 = vrot.slane %v295_v5, 4  ;;  %v303_v9 = vrot.slane %v295_v5, 2 }
 0x25a   :  { %139 = vrot.lane.b32.xlu0 %v128_v62, %s477_s24 }
 0x25c   :  { %306 = vrot.lane.b32.xlu1 %v295_v5, %s474_s0 }
 0x25e   :  { %298 = vrot.lane.b32.xlu0 %v297_v6, %s479_s25 }
 0x260   :  { %301 = vrot.lane.b32.xlu1 %v300_v7, %s480_s26 }
 0x262   :  { %304 = vrot.lane.b32.xlu0 %v303_v9, %s476_s23 }
 0x264   :  { %310 = vrot.lane.b32.xlu1 %v300_v7, %s481_s27 }
 0x266   :  { %308 = vrot.lane.b32.xlu0 %v297_v6, %s477_s24 }
 0x26a   :  { %157 = vperm.xlu0 %448, %v25_v10  }
 0x2c2   :  { %v138_v11 = vpop.permute.xlu1 %137 }
 0x2c4   :  { %v130_v12 = vpop.permute.xlu0 %129 }
 0x2c5   :  { %v144_v13 = vsel %vm53_vm4, %v126_v61, %v130_v12 }
 0x2c6   :  { %v133_v14 = vpop.permute.xlu1 %132 }
 0x2c7   :  { %v146_v15 = vsel %vm56_vm3, %v144_v13, %v133_v14 }
 0x2c8   :  { %v136_v16 = vpop.permute.xlu0 %135 }
 0x2c9   :  { %v148_v17 = vsel %vm59_vm5, %v146_v15, %v136_v16 }
 0x2ca   :  { %412 = vmatpush3.bf16.msra.mxu1 %v148_v17  ;;  %v142_v18 = vpop.permute.xlu1 %141 }
 0x2cb   :  { %413 = vmatprep.subr.bf16.mxu1 %v475_v8 }
 0x2cc   :  { %v140_v19 = vpop.permute.xlu0 %139 }
 0x2cd   :  { %v152_v20 = vsel %vm53_vm4, %v138_v11, %v140_v19 }
 0x2ce   :  { %v307_v21 = vpop.permute.xlu1 %306  ;;  %v154_v22 = vsel %vm56_vm3, %v152_v20, %v142_v18 }
 0x2cf   :  { %v163_v23 = vsel %vm59_vm5, %v154_v22, 0 }
 0x2d0   :  { %v299_v24 = vpop.permute.xlu0 %298  ;;  %414 = vmatpush3.bf16.msra.mxu1 %v163_v23 }
 0x2d1   :  { %v313_v26 = vsel %vm53_vm4, %v295_v5, %v299_v24  ;;  %427 = vmatprep.subr.bf16.mxu1 %v475_v8 }
 0x2d2   :  { %v302_v27 = vpop.permute.xlu1 %301 }
 0x2d3   :  { %v315_v28 = vsel %vm56_vm3, %v313_v26, %v302_v27  ;;  %416 = vmatmul.mubr.msk.bf16.vlgmr.msra.gmra.mrb[0].mxu1 %vm73_vm6, %v24_v25 }
 0x2d4   :  { %v305_v29 = vpop.permute.xlu0 %304  ;;  %431 = vmatprep.mubr.msk.bf16.mxu1 %vm478_vm2, %v475_v8 }
 0x2d5   :  { %v317_v30 = vsel %vm59_vm5, %v315_v28, %v305_v29 }
 0x2d6   :  { %428 = vmatpush3.bf16.msra.mxu1 %v317_v30  ;;  %v311_v32 = vpop.permute.xlu1 %310 }
 0x2d7   :  { %429 = vmatprep.subr.bf16.mxu1 %v475_v8 }
 0x2d8   :  { %v309_v31 = vpop.permute.xlu0 %308 }
 0x2d9   :  { %v321_v33 = vsel %vm53_vm4, %v307_v21, %v309_v31 }
 0x2da   :  { %v323_v34 = vsel %vm56_vm3, %v321_v33, %v311_v32 }
 0x2db   :  { %v324_v35 = vsel %vm59_vm5, %v323_v34, 0 }
 0x2dc   :  { %430 = vmatpush3.bf16.msra.mxu1 %v324_v35 }
 0x2df   :  { %432 = vmatmul.mubr.msk.bf16.vlgmr.msra.gmra.mrb[4].mxu1 %vm73_vm6, %v24_v25 }
 0x2e9   :  { %v158_v36 = vpop.permute.xlu0 %157 }
 0x3a6   :  { %v199_v37 = vpop.f32.mrb[0].mxu1 }
 0x3a7   :  { %v200_v38 = vadd.f32 %v199_v37, %v158_v36  ;;  %v417_v39 = vpop.f32.mrb[1].mxu1 }
 0x3a8   :  { %v202_v40 = vpop.f32.mrb[2].mxu1 }
 0x3a9   :  { %v205_v41 = vadd.f32 %v200_v38, %v519_v0  ;;  %v418_v42 = vpop.f32.mrb[3].mxu1 }
 0x3ab   :  { %v206_v8 = vmax.f32 %v205_v41, 0.0 }
 0x3ad   :  { %208 = vst.msk [vmem:[#allocation2] sm:$0xf] %vm207_vm7, %v206_v8 }
 0x3b2   :  { %v360_v43 = vpop.f32.mrb[4].mxu1 }
 0x3b3   :  { %v361_v44 = vadd.f32 %v360_v43, %v158_v36  ;;  %v433_v45 = vpop.f32.mrb[5].mxu1 }
 0x3b4   :  { %v363_v46 = vpop.f32.mrb[6].mxu1 }
 0x3b5   :  { %v366_v47 = vadd.f32 %v524_v1, %v361_v44  ;;  %v434_v48 = vpop.f32.mrb[7].mxu1 }
 0x3b7   :  { %v367_v49 = vmax.f32 %v366_v47, 0.0 }
 0x3b9   :  { %369 = vst.msk [vmem:[#allocation2 + $0x4] sm:$0xf] %vm207_vm7, %v367_v49 }
 0x3ba   :  { %460 = shalt.err (!%p457_p4)
}
 0x3bb   :  { %s461_s12 = scalar_lea.hbm %s641_s5, 128 }
 0x3bc   :  { %p462_p5 = scmp.ne.s32.totalorder %s641_s5, %s461_s12  ;;  %p465_p6 = scmp.lt.u32.totalorder %s461_s12, %s641_s5 }
 0x3be   :  { %p467_p7 = pnand %p465_p6, %p462_p5 }
 0x3c0   :  { %470 = shalt.err (!%p467_p7)
}
 0x3c1   :  { %s484_s17 = smov 64   ;;  %s485_s18 = smov 4  }
 0x3c2   :  { %381 = dma.vmem_to_hbm [thread:$0]  %s376_s8, 128, %s641_s5, [#allocation3], %s484_s17, %s484_s17, %s485_s18  }
 0x3c3   :  { %471 = dma.done.wait [#allocation3], 128  }
 0x3c4   :  { %472 = vsyncadd [#allocation3], 4294967168 }
 0x3c5   :  { %385 = vsyncpa [#allocation3], 1 }

</bundles_post_ra>
